<compile_context>
chip_gen: v6e
topology: v6e:2x2x1
jax: 0.10.0
libtpu: 0.0.40
codegen_flags: <defaults>
</compile_context>

<pallas_src>
import functools
import math

import jax
import jax.numpy as jnp
import numpy as np
from jax import lax
from jax.experimental import pallas as pl
from jax.experimental.pallas import tpu as pltpu


def _round_up(x, m):
    return (x + m - 1) // m * m


def _layernorm(x, gamma, beta, d_real, eps):
    """LayerNorm over the last axis; `x` may be zero-padded beyond d_real."""
    d_pad = x.shape[-1]
    mean = jnp.sum(x, axis=-1, keepdims=True) * (1.0 / d_real)
    centered = x - mean
    if d_pad != d_real:
        # Kill the (0 - mean) values in padded lanes before the variance sum.
        col = lax.broadcasted_iota(jnp.int32, x.shape, dimension=1)
        centered = jnp.where(col < d_real, centered, 0.0)
    var = jnp.sum(centered * centered, axis=-1, keepdims=True) * (1.0 / d_real)
    xn = centered * lax.rsqrt(var + eps)
    # gamma is zero-padded -> padded lanes stay exactly 0 after scaling.
    return xn * gamma + beta


def _silu(x):
    return x * jax.nn.sigmoid(x)


def _ff_glu_kernel(x_ref, wx_ref, bx_ref, wg_ref, bg_ref, w2_ref, b2_ref,
                   g_ref, be_ref, o_ref, *, d_real, eps):
    x = x_ref[...].astype(jnp.float32)
    xn = _layernorm(x, g_ref[...], be_ref[...], d_real, eps)

    xn_b = xn.astype(jnp.bfloat16)
    # Two [tm, D] x [D, ff2] matmuls instead of one [tm, 2*ff2] + slicing.
    h_x = jnp.dot(xn_b, wx_ref[...], preferred_element_type=jnp.float32) + bx_ref[...]
    h_g = jnp.dot(xn_b, wg_ref[...], preferred_element_type=jnp.float32) + bg_ref[...]
    act = _silu(h_g) * h_x                      # chunk order: (x, gate)

    out = jnp.dot(act.astype(jnp.bfloat16), w2_ref[...],
                  preferred_element_type=jnp.float32) + b2_ref[...]
    o_ref[...] = out.astype(o_ref.dtype)


def _ff_plain_kernel(x_ref, w1_ref, b1_ref, w2_ref, b2_ref, g_ref, be_ref,
                     o_ref, *, d_real, eps):
    x = x_ref[...].astype(jnp.float32)
    xn = _layernorm(x, g_ref[...], be_ref[...], d_real, eps)

    h = jnp.dot(xn.astype(jnp.bfloat16), w1_ref[...],
                preferred_element_type=jnp.float32) + b1_ref[...]
    act = _silu(h)

    out = jnp.dot(act.astype(jnp.bfloat16), w2_ref[...],
                  preferred_element_type=jnp.float32) + b2_ref[...]
    o_ref[...] = out.astype(o_ref.dtype)


def _pad2d(a, rows, cols):
    return jnp.pad(a, ((0, rows - a.shape[0]), (0, cols - a.shape[1])))


def feed_forward(x, params, *, glu, tm=256):
    """x: [B, S, D] float32. params: dict of weights (see init_params)."""
    B, S, D = x.shape
    M = B * S
    eps = 1e-6

    w1 = params["w1"]               # [ff1, D]
    w2 = params["w2"]               # [D, ff2]
    b1 = params["b1"]               # [ff1]
    b2 = params["b2"]               # [D]
    gamma = params["gamma"]         # [D]
    beta = params["beta"]           # [D]

    ff1 = w1.shape[0]
    ff2 = w2.shape[1]

    # Lane-dense padding of the feature dims (multiples of 128).
    D_pad = _round_up(D, 128)
    ff2_pad = _round_up(ff2, 128)
    ff1_pad = _round_up(ff1, 128)

    # Row tiling: pad M up to a multiple of the effective tile (no asserts).
    tm_eff = max(8, min(tm, _round_up(M, 8)))
    M_pad = _round_up(M, tm_eff)
    grid = (M_pad // tm_eff,)

    # Pad activations / params with zeros (zero pads are exactly neutral:
    # gamma=0 on padded lanes, zero weight rows/cols, zero bias pads).
    x2d = _pad2d(x.reshape(M, D), M_pad, D_pad)
    w2t_p = _pad2d(w2.T, ff2_pad, D_pad).astype(jnp.bfloat16)       # [ff2p, Dp]
    b2_p = _pad2d(b2.reshape(1, -1), 1, D_pad)
    gamma_p = _pad2d(gamma.reshape(1, -1), 1, D_pad)
    beta_p = _pad2d(beta.reshape(1, -1), 1, D_pad)

    # Cost estimate (real, unpadded work).
    flops = 2 * M * (D * ff1 + ff2 * D)
    transcendentals = M * (ff2 if glu else ff1)
    bytes_accessed = (2 * M * D * 4            # x in + out (f32)
                      + (ff1 * D + ff2 * D) * 2  # bf16 weights
                      + (ff1 + 2 * D) * 4)       # biases + LN params
    cost = pl.CostEstimate(flops=flops, transcendentals=transcendentals,
                           bytes_accessed=bytes_accessed)

    # VMEM budget (sized so it also fits v7x's 64 MiB VMEM with headroom):
    # double-buffered f32 x/out tiles + double-buffered bf16 weights +
    # f32 intermediates of the tile.
    est = (2 * 2 * tm_eff * D_pad * 4
           + 2 * 2 * (D_pad * ff1_pad + ff2_pad * D_pad)
           + 2 * tm_eff * (ff1_pad + ff2_pad) * 4)
    vmem_limit = int(min(max(2 * est, 32 * 1024 * 1024), 48 * 1024 * 1024))

    cparams = pltpu.CompilerParams(
        dimension_semantics=("parallel",),
        vmem_limit_bytes=vmem_limit,
    )

    row_spec = pl.BlockSpec((tm_eff, D_pad), lambda i: (i, 0))
    vec_d = pl.BlockSpec((1, D_pad), lambda i: (0, 0))

    if glu:
        # Split W1 so the kernel never slices the [tm, ff1] intermediate.
        w1x_t = _pad2d(w1[:ff2].T, D_pad, ff2_pad).astype(jnp.bfloat16)
        w1g_t = _pad2d(w1[ff2:].T, D_pad, ff2_pad).astype(jnp.bfloat16)
        b1x = _pad2d(b1[:ff2].reshape(1, -1), 1, ff2_pad)
        b1g = _pad2d(b1[ff2:].reshape(1, -1), 1, ff2_pad)

        kernel = functools.partial(_ff_glu_kernel, d_real=D, eps=eps)
        in_specs = [
            row_spec,                                                 # x rows
            pl.BlockSpec((D_pad, ff2_pad), lambda i: (0, 0)),         # W_x^T
            pl.BlockSpec((1, ff2_pad), lambda i: (0, 0)),             # b_x
            pl.BlockSpec((D_pad, ff2_pad), lambda i: (0, 0)),         # W_gate^T
            pl.BlockSpec((1, ff2_pad), lambda i: (0, 0)),             # b_gate
            pl.BlockSpec((ff2_pad, D_pad), lambda i: (0, 0)),         # W2^T
            vec_d,                                                    # b2
            vec_d,                                                    # gamma
            vec_d,                                                    # beta
        ]
        args = (x2d, w1x_t, b1x, w1g_t, b1g, w2t_p, b2_p, gamma_p, beta_p)
    else:
        w1t_p = _pad2d(w1.T, D_pad, ff1_pad).astype(jnp.bfloat16)     # [Dp, ff1p]
        b1_p = _pad2d(b1.reshape(1, -1), 1, ff1_pad)

        kernel = functools.partial(_ff_plain_kernel, d_real=D, eps=eps)
        in_specs = [
            row_spec,                                                 # x rows
            pl.BlockSpec((D_pad, ff1_pad), lambda i: (0, 0)),         # W1^T
            pl.BlockSpec((1, ff1_pad), lambda i: (0, 0)),             # b1
            pl.BlockSpec((ff2_pad, D_pad), lambda i: (0, 0)),         # W2^T
            vec_d,                                                    # b2
            vec_d,                                                    # gamma
            vec_d,                                                    # beta
        ]
        args = (x2d, w1t_p, b1_p, w2t_p, b2_p, gamma_p, beta_p)

    out2d = pl.pallas_call(
        kernel,
        out_shape=jax.ShapeDtypeStruct((M_pad, D_pad), x.dtype),
        grid_spec=pltpu.PrefetchScalarGridSpec(
            num_scalar_prefetch=0,
            grid=grid,
            in_specs=in_specs,
            out_specs=row_spec,
        ),
        compiler_params=cparams,
        cost_estimate=cost,
    )(*args)

    return out2d[:M, :D].reshape(B, S, D)


def init_params(key, model_dim, ff_dim, use_bias, glu, initializer_range,
                zero_init, n_layers):
    """Deterministic parameter init matching FeedForward.__init__/initialize."""
    if glu:
        ff_dim_2 = int(np.exp2(np.ceil(np.log2(256 * 4 / 3))))   # = 512
        ff_dim_1 = ff_dim_2 * 2                                   # = 1024
    else:
        ff_dim_1, ff_dim_2 = ff_dim, ff_dim

    k1, k2 = jax.random.split(key)
    w1 = initializer_range * jax.random.normal(
        k1, (ff_dim_1, model_dim), dtype=jnp.float32)
    if zero_init:
        w2 = jnp.zeros((model_dim, ff_dim_2), dtype=jnp.float32)
    else:
        w2 = (initializer_range / math.sqrt(2 * n_layers)) * jax.random.normal(
            k2, (model_dim, ff_dim_2), dtype=jnp.float32)

    # biases are zero-initialized when use_bias; adding zero reproduces the
    # bias=False semantics exactly, so we pass zeros either way.
    b1 = jnp.zeros((ff_dim_1,), dtype=jnp.float32)
    b2 = jnp.zeros((model_dim,), dtype=jnp.float32)

    gamma = jnp.ones((model_dim,), dtype=jnp.float32)   # LayerNorm weight
    beta = jnp.zeros((model_dim,), dtype=jnp.float32)   # LayerNorm bias

    return dict(w1=w1, b1=b1, w2=w2, b2=b2, gamma=gamma, beta=beta)


def feed_forward_ref(x, params, *, glu):
    """Pure-JAX f32 reference for validation."""
    mean = jnp.mean(x, axis=-1, keepdims=True)
    var = jnp.mean((x - mean) ** 2, axis=-1, keepdims=True)
    xn = (x - mean) * lax.rsqrt(var + 1e-6)
    xn = xn * params["gamma"] + params["beta"]
    h = xn @ params["w1"].T + params["b1"]
    if glu:
        ff2 = params["w2"].shape[1]
        x_part, gate = h[..., :ff2], h[..., ff2:]
        act = jax.nn.silu(gate) * x_part
    else:
        act = jax.nn.silu(h)
    return act @ params["w2"].T + params["b2"]


if __name__ == "__main__":
    # Small config consistent with the module.
    model_dim = 64
    ff_dim = 256            # ignored when glu=True (module hardcodes 1024/512)
    use_bias = True
    glu = True
    initializer_range = 0.02
    zero_init = False
    n_layers = 4

    B, S = 2, 8

    key = jax.random.PRNGKey(0)
    kx, kp = jax.random.split(key)
    x = jax.random.normal(kx, (B, S, model_dim), dtype=jnp.float32)
    params = init_params(kp, model_dim, ff_dim, use_bias, glu,
                         initializer_range, zero_init, n_layers)

    out = feed_forward(x, params, glu=glu)
    out = jax.block_until_ready(out)

    ref = feed_forward_ref(x, params, glu=glu)
    # Matmul operands are rounded to bf16 (f32 accumulation), so tolerances
    # are loosened relative to a pure-f32 path.
    np.testing.assert_allclose(np.asarray(out), np.asarray(ref),
                               rtol=2e-2, atol=2e-3)

    print("KERNEL_OK")
</pallas_src>

<mosaic_0001>
module attributes {stable_mosaic.version = 11 : i64} {
  func.func @_ff_glu_kernel(%arg0: i32, %arg1: memref<16x128xf32, #tpu.memory_space<vmem>>, %arg2: memref<128x512xbf16, #tpu.memory_space<vmem>>, %arg3: memref<1x512xf32, #tpu.memory_space<vmem>>, %arg4: memref<128x512xbf16, #tpu.memory_space<vmem>>, %arg5: memref<1x512xf32, #tpu.memory_space<vmem>>, %arg6: memref<512x128xbf16, #tpu.memory_space<vmem>>, %arg7: memref<1x128xf32, #tpu.memory_space<vmem>>, %arg8: memref<1x128xf32, #tpu.memory_space<vmem>>, %arg9: memref<1x128xf32, #tpu.memory_space<vmem>>, %arg10: memref<16x128xf32, #tpu.memory_space<vmem>>) attributes {dimension_semantics = [#tpu.dimension_semantics<parallel>], iteration_bounds = array<i64: 1>, scalar_prefetch = 0 : i64, scratch_operands = 0 : i64, tpu.core_type = #tpu.core_type<tc>, window_params = [{transform_indices = @transform_0, window_bounds = array<i64: 16, 128>}, {pipeline_mode = #tpu.pipeline_mode<synchronous>, transform_indices = @transform_1, window_bounds = array<i64: 128, 512>}, {pipeline_mode = #tpu.pipeline_mode<synchronous>, transform_indices = @transform_2, window_bounds = array<i64: 1, 512>}, {pipeline_mode = #tpu.pipeline_mode<synchronous>, transform_indices = @transform_3, window_bounds = array<i64: 128, 512>}, {pipeline_mode = #tpu.pipeline_mode<synchronous>, transform_indices = @transform_4, window_bounds = array<i64: 1, 512>}, {pipeline_mode = #tpu.pipeline_mode<synchronous>, transform_indices = @transform_5, window_bounds = array<i64: 512, 128>}, {pipeline_mode = #tpu.pipeline_mode<synchronous>, transform_indices = @transform_6, window_bounds = array<i64: 1, 128>}, {pipeline_mode = #tpu.pipeline_mode<synchronous>, transform_indices = @transform_7, window_bounds = array<i64: 1, 128>}, {pipeline_mode = #tpu.pipeline_mode<synchronous>, transform_indices = @transform_8, window_bounds = array<i64: 1, 128>}, {transform_indices = @transform_9, window_bounds = array<i64: 16, 128>}]} {
    %c0 = arith.constant 0 : index
    %c0_0 = arith.constant 0 : index
    %0 = vector.load %arg1[%c0, %c0_0] : memref<16x128xf32, #tpu.memory_space<vmem>>, vector<16x128xf32>
    %c0_1 = arith.constant 0 : index
    %c0_2 = arith.constant 0 : index
    %1 = vector.load %arg8[%c0_1, %c0_2] : memref<1x128xf32, #tpu.memory_space<vmem>>, vector<1x128xf32>
    %c0_3 = arith.constant 0 : index
    %c0_4 = arith.constant 0 : index
    %2 = vector.load %arg9[%c0_3, %c0_4] : memref<1x128xf32, #tpu.memory_space<vmem>>, vector<1x128xf32>
    %cst = arith.constant dense<0.000000e+00> : vector<16xf32>
    %3 = vector.multi_reduction <add>, %0, %cst [1] : vector<16x128xf32> to vector<16xf32>
    %4 = vector.shape_cast %3 : vector<16xf32> to vector<16x1xf32>
    %cst_5 = arith.constant 1.562500e-02 : f32
    %5 = vector.broadcast %cst_5 : f32 to vector<16x1xf32>
    %6 = arith.mulf %4, %5 : vector<16x1xf32>
    %7 = vector.broadcast %6 : vector<16x1xf32> to vector<16x128xf32>
    %8 = arith.subf %0, %7 : vector<16x128xf32>
    %9 = tpu.iota {dimensions = array<i32: 1>} : vector<16x128xi32>
    %c64_i32 = arith.constant 64 : i32
    %10 = vector.broadcast %c64_i32 : i32 to vector<16x128xi32>
    %11 = arith.cmpi slt, %9, %10 : vector<16x128xi32>
    %cst_6 = arith.constant 0.000000e+00 : f32
    %12 = vector.broadcast %cst_6 : f32 to vector<16x128xf32>
    %13 = arith.select %11, %8, %12 : vector<16x128xi1>, vector<16x128xf32>
    %14 = arith.mulf %13, %13 : vector<16x128xf32>
    %cst_7 = arith.constant dense<0.000000e+00> : vector<16xf32>
    %15 = vector.multi_reduction <add>, %14, %cst_7 [1] : vector<16x128xf32> to vector<16xf32>
    %16 = vector.shape_cast %15 : vector<16xf32> to vector<16x1xf32>
    %cst_8 = arith.constant 1.562500e-02 : f32
    %17 = vector.broadcast %cst_8 : f32 to vector<16x1xf32>
    %18 = arith.mulf %16, %17 : vector<16x1xf32>
    %cst_9 = arith.constant 9.99999997E-7 : f32
    %19 = vector.broadcast %cst_9 : f32 to vector<16x1xf32>
    %20 = arith.addf %18, %19 : vector<16x1xf32>
    %21 = math.rsqrt %20 : vector<16x1xf32>
    %22 = vector.broadcast %21 : vector<16x1xf32> to vector<16x128xf32>
    %23 = arith.mulf %13, %22 : vector<16x128xf32>
    %24 = vector.broadcast %1 : vector<1x128xf32> to vector<16x128xf32>
    %25 = arith.mulf %23, %24 : vector<16x128xf32>
    %26 = vector.broadcast %2 : vector<1x128xf32> to vector<16x128xf32>
    %27 = arith.addf %25, %26 : vector<16x128xf32>
    %28 = arith.truncf %27 : vector<16x128xf32> to vector<16x128xbf16>
    %c0_10 = arith.constant 0 : index
    %c0_11 = arith.constant 0 : index
    %29 = vector.load %arg2[%c0_10, %c0_11] : memref<128x512xbf16, #tpu.memory_space<vmem>>, vector<128x512xbf16>
    %cst_12 = arith.constant dense<0.000000e+00> : vector<16x512xf32>
    %30 = tpu.matmul %28, %29, %cst_12 {dimension_numbers = #tpu.dot_dimension_numbers<[1], [0], [0], [1], [0, 0, 1, 1], [], []>} : vector<16x128xbf16>, vector<128x512xbf16>, vector<16x512xf32> -> vector<16x512xf32>
    %c0_13 = arith.constant 0 : index
    %c0_14 = arith.constant 0 : index
    %31 = vector.load %arg3[%c0_13, %c0_14] : memref<1x512xf32, #tpu.memory_space<vmem>>, vector<1x512xf32>
    %32 = vector.broadcast %31 : vector<1x512xf32> to vector<16x512xf32>
    %33 = arith.addf %30, %32 : vector<16x512xf32>
    %c0_15 = arith.constant 0 : index
    %c0_16 = arith.constant 0 : index
    %34 = vector.load %arg4[%c0_15, %c0_16] : memref<128x512xbf16, #tpu.memory_space<vmem>>, vector<128x512xbf16>
    %cst_17 = arith.constant dense<0.000000e+00> : vector<16x512xf32>
    %35 = tpu.matmul %28, %34, %cst_17 {dimension_numbers = #tpu.dot_dimension_numbers<[1], [0], [0], [1], [0, 0, 1, 1], [], []>} : vector<16x128xbf16>, vector<128x512xbf16>, vector<16x512xf32> -> vector<16x512xf32>
    %c0_18 = arith.constant 0 : index
    %c0_19 = arith.constant 0 : index
    %36 = vector.load %arg5[%c0_18, %c0_19] : memref<1x512xf32, #tpu.memory_space<vmem>>, vector<1x512xf32>
    %37 = vector.broadcast %36 : vector<1x512xf32> to vector<16x512xf32>
    %38 = arith.addf %35, %37 : vector<16x512xf32>
    %39 = arith.negf %38 : vector<16x512xf32>
    %40 = math.exp %39 : vector<16x512xf32>
    %cst_20 = arith.constant 1.000000e+00 : f32
    %41 = vector.broadcast %cst_20 : f32 to vector<16x512xf32>
    %42 = arith.addf %41, %40 : vector<16x512xf32>
    %43 = arith.divf %41, %42 : vector<16x512xf32>
    %44 = arith.mulf %38, %43 : vector<16x512xf32>
    %45 = arith.mulf %44, %33 : vector<16x512xf32>
    %46 = arith.truncf %45 : vector<16x512xf32> to vector<16x512xbf16>
    %c0_21 = arith.constant 0 : index
    %c0_22 = arith.constant 0 : index
    %47 = vector.load %arg6[%c0_21, %c0_22] : memref<512x128xbf16, #tpu.memory_space<vmem>>, vector<512x128xbf16>
    %cst_23 = arith.constant dense<0.000000e+00> : vector<16x128xf32>
    %48 = tpu.matmul %46, %47, %cst_23 {dimension_numbers = #tpu.dot_dimension_numbers<[1], [0], [0], [1], [0, 0, 1, 1], [], []>} : vector<16x512xbf16>, vector<512x128xbf16>, vector<16x128xf32> -> vector<16x128xf32>
    %c0_24 = arith.constant 0 : index
    %c0_25 = arith.constant 0 : index
    %49 = vector.load %arg7[%c0_24, %c0_25] : memref<1x128xf32, #tpu.memory_space<vmem>>, vector<1x128xf32>
    %50 = vector.broadcast %49 : vector<1x128xf32> to vector<16x128xf32>
    %51 = arith.addf %48, %50 : vector<16x128xf32>
    %c0_26 = arith.constant 0 : index
    %c0_27 = arith.constant 0 : index
    %52 = vector.load %arg10[%c0_26, %c0_27] : memref<16x128xf32, #tpu.memory_space<vmem>>, vector<16x128xf32>
    tpu.vector_store %arg10[%c0_26, %c0_27], %51 {strides = array<i32>} : memref<16x128xf32, #tpu.memory_space<vmem>>, vector<16x128xf32>,
    return
  }
  func.func @transform_0(%arg0: i32) -> (i32, i32) {
    %c0_i32 = arith.constant 0 : i32
    %c0_i32_0 = arith.constant 0 : i32
    return %arg0, %c0_i32 : i32, i32
  }
  func.func @transform_1(%arg0: i32) -> (i32, i32) {
    %c0_i32 = arith.constant 0 : i32
    %c0_i32_0 = arith.constant 0 : i32
    %c0_i32_1 = arith.constant 0 : i32
    return %c0_i32, %c0_i32_0 : i32, i32
  }
  func.func @transform_2(%arg0: i32) -> (i32, i32) {
    %c0_i32 = arith.constant 0 : i32
    %c0_i32_0 = arith.constant 0 : i32
    %c0_i32_1 = arith.constant 0 : i32
    return %c0_i32, %c0_i32_0 : i32, i32
  }
  func.func @transform_3(%arg0: i32) -> (i32, i32) {
    %c0_i32 = arith.constant 0 : i32
    %c0_i32_0 = arith.constant 0 : i32
    %c0_i32_1 = arith.constant 0 : i32
    return %c0_i32, %c0_i32_0 : i32, i32
  }
  func.func @transform_4(%arg0: i32) -> (i32, i32) {
    %c0_i32 = arith.constant 0 : i32
    %c0_i32_0 = arith.constant 0 : i32
    %c0_i32_1 = arith.constant 0 : i32
    return %c0_i32, %c0_i32_0 : i32, i32
  }
  func.func @transform_5(%arg0: i32) -> (i32, i32) {
    %c0_i32 = arith.constant 0 : i32
    %c0_i32_0 = arith.constant 0 : i32
    %c0_i32_1 = arith.constant 0 : i32
    return %c0_i32, %c0_i32_0 : i32, i32
  }
  func.func @transform_6(%arg0: i32) -> (i32, i32) {
    %c0_i32 = arith.constant 0 : i32
    %c0_i32_0 = arith.constant 0 : i32
    %c0_i32_1 = arith.constant 0 : i32
    return %c0_i32, %c0_i32_0 : i32, i32
  }
  func.func @transform_7(%arg0: i32) -> (i32, i32) {
    %c0_i32 = arith.constant 0 : i32
    %c0_i32_0 = arith.constant 0 : i32
    %c0_i32_1 = arith.constant 0 : i32
    return %c0_i32, %c0_i32_0 : i32, i32
  }
  func.func @transform_8(%arg0: i32) -> (i32, i32) {
    %c0_i32 = arith.constant 0 : i32
    %c0_i32_0 = arith.constant 0 : i32
    %c0_i32_1 = arith.constant 0 : i32
    return %c0_i32, %c0_i32_0 : i32, i32
  }
  func.func @transform_9(%arg0: i32) -> (i32, i32) {
    %c0_i32 = arith.constant 0 : i32
    %c0_i32_0 = arith.constant 0 : i32
    return %arg0, %c0_i32 : i32, i32
  }
}

</mosaic_0001>

<bundles_post_ra>
// kernel: tpu_custom_call.1
= control target key start
LH: loop header
LB: loop body
LE: loop exit
PB: predicated region body
PF: predicated region fallthrough
CT: control target
= control target key end

     0   :  { %14 = vsyncpa [#allocation3], 0  ;;  %s1813_s0 = inlined_call_operand.hbm [shape: f32[16,128], index: 0, kind: input, shape index: {}]   ;;  %s1814_s1 = inlined_call_operand.hbm [shape: bf16[128,512], index: 1, kind: input, shape index: {}]   ;;  %s1815_s2 = inlined_call_operand.hbm [shape: f32[1,512], index: 2, kind: input, shape index: {}]   ;;  %s1816_s3 = inlined_call_operand.hbm [shape: bf16[128,512], index: 3, kind: input, shape index: {}]   ;;  %s1817_s4 = inlined_call_operand.vmem [shape: f32[1,512], index: 4, kind: input, shape index: {}]   ;;  %s1818_s5 = inlined_call_operand.hbm [shape: bf16[512,128], index: 5, kind: input, shape index: {}]   ;;  %s1819_s6 = inlined_call_operand.vmem [shape: f32[1,128], index: 6, kind: input, shape index: {}]   ;;  %s1820_s7 = inlined_call_operand.vmem [shape: f32[1,128], index: 7, kind: input, shape index: {}]   ;;  %s1821_s8 = inlined_call_operand.vmem [shape: f32[1,128], index: 8, kind: input, shape index: {}]   ;;  %s1822_s9 = inlined_call_operand.hbm [shape: f32[16,128], index: 9, kind: output, shape index: {}]  }
   0x1   :  { %15 = vsyncpa [#allocation6], 0 }
   0x2   :  { %16 = vsyncpa [#allocation9], 0 }
   0x3   :  { %17 = vsyncpa [#allocation4], 0  ;;  %s1638_s30 = smov [#allocation5]  }
   0x4   :  { %s35_s10 = sshll.u32 %s1638_s30, 4  ;;  %s36_s10 = int_to_ptr.vmem [resolvable:$true] %s35_s10 }
   0x5   :  { %s1518_s11 = scalar_lea.vmem %s36_s10, 4096  ;;  %p1523_p1 = scmp.lt.s32.totalorder %s36_s10, %s36_s10 }
   0x6   :  { %p1519_p0 = scmp.ne.s32.totalorder %s36_s10, %s1518_s11  ;;  %p1524_p2 = scmp.lt.s32.totalorder %s1518_s11, %s1518_s11 }
   0x8   :  { %p1525_p3 = por %p1524_p2, %p1523_p1 }
   0xa   :  { %p1526_p4 = pnand %p1525_p3, %p1519_p0 }
   0xc   :  { %1529 = shalt.err (!%p1526_p4)
}
   0xd   :  { %s1639_s12 = smov 256   ;;  %s1640_s13 = smov 16  }
   0xe   :  { %41 = dma.hbm_to_vmem [thread:$0]  %s1814_s1, 4096, %s36_s10, [#allocation6], %s1639_s12, %s1639_s12, %s1640_s13  }
   0xf   :  { %s1641_s16 = smov [#allocation8]   ;;  %s1642_s18 = smov [#allocation2]  }
  0x10   :  { %s57_s17 = sshll.u32 %s1641_s16, 4  ;;  %s23_s19 = sshll.u32 %s1642_s18, 4  ;;  %s58_s17 = int_to_ptr.vmem [resolvable:$true] %s57_s17  ;;  %s24_s19 = int_to_ptr.vmem [resolvable:$true] %s23_s19 }
  0x11   :  { %s1538_s20 = scalar_lea.vmem %s58_s17, 4096  ;;  %p1543_p6 = scmp.lt.s32.totalorder %s58_s17, %s58_s17 }
  0x12   :  { %p1539_p5 = scmp.ne.s32.totalorder %s58_s17, %s1538_s20  ;;  %p1544_p7 = scmp.lt.s32.totalorder %s1538_s20, %s1538_s20 }
  0x14   :  { %p1545_p8 = por %p1544_p7, %p1543_p6 }
  0x16   :  { %p1546_p9 = pnand %p1545_p8, %p1539_p5 }
  0x18   :  { %1549 = shalt.err (!%p1546_p9)
}
  0x19   :  { %63 = dma.hbm_to_vmem [thread:$0]  %s1816_s3, 4096, %s58_s17, [#allocation9], %s1639_s12, %s1639_s12, %s1640_s13  }
  0x1a   :  { %s1558_s23 = scalar_lea.vmem %s24_s19, 256  ;;  %p1563_p11 = scmp.lt.s32.totalorder %s24_s19, %s24_s19 }
  0x1b   :  { %p1559_p10 = scmp.ne.s32.totalorder %s24_s19, %s1558_s23  ;;  %p1564_p12 = scmp.lt.s32.totalorder %s1558_s23, %s1558_s23 }
  0x1d   :  { %p1565_p13 = por %p1564_p12, %p1563_p11 }
  0x1f   :  { %p1566_p0 = pnand %p1565_p13, %p1559_p10 }
  0x21   :  { %1569 = shalt.err (!%p1566_p0)
}
  0x22   :  { %s1643_s1 = smov 128   ;;  %s1644_s24 = smov 8  }
  0x23   :  { %29 = dma.hbm_to_vmem [thread:$0]  %s1813_s0, 256, %s24_s19, [#allocation3], %s1643_s1, %s1643_s1, %s1644_s24  }
  0x24   :  { %s1645_s27 = smov [#allocation7]   ;;  %s1646_s3 = smov [#allocation10]  }
  0x25   :  { %s48_s28 = sshll.u32 %s1645_s27, 4  ;;  %s71_s29 = sshll.u32 %s1646_s3, 4  ;;  %s49_s28 = int_to_ptr.vmem [resolvable:$true] %s48_s28  ;;  %s72_s29 = int_to_ptr.vmem [resolvable:$true] %s71_s29 }
  0x26   :  { %s1578_s30 = scalar_lea.vmem %s49_s28, 64  ;;  %p1583_p2 = scmp.lt.s32.totalorder %s49_s28, %s49_s28 }
  0x27   :  { %p1579_p1 = scmp.ne.s32.totalorder %s49_s28, %s1578_s30  ;;  %p1584_p3 = scmp.lt.s32.totalorder %s1578_s30, %s1578_s30 }
  0x29   :  { %p1585_p4 = por %p1584_p3, %p1583_p2 }
  0x2b   :  { %p1586_p5 = pnand %p1585_p4, %p1579_p1 }
  0x2d   :  { %1589 = shalt.err (!%p1586_p5)
}
  0x2e   :  { %51 = dma.hbm_to_vmem [thread:$0]  %s1815_s2, 64, %s49_s28, [#allocation6]  }
  0x2f   :  { %s1598_s12 = scalar_lea.vmem %s72_s29, 4096  ;;  %p1603_p7 = scmp.lt.s32.totalorder %s72_s29, %s72_s29 }
  0x30   :  { %p1599_p6 = scmp.ne.s32.totalorder %s72_s29, %s1598_s12  ;;  %p1604_p8 = scmp.lt.s32.totalorder %s1598_s12, %s1598_s12 }
  0x32   :  { %p1605_p9 = por %p1604_p8, %p1603_p7 }
  0x34   :  { %p1606_p10 = pnand %p1605_p9, %p1599_p6 }
  0x36   :  { %1609 = shalt.err (!%p1606_p10)
}
  0x37   :  { %s1647_s0 = smov 64   ;;  %s1648_s13 = smov 4  }
  0x38   :  { %77 = dma.hbm_to_vmem [thread:$0]  %s1818_s5, 4096, %s72_s29, [#allocation9], %s1647_s0, %s1647_s0, %s1648_s13  }
  0x39   :  { %1630 = dma.done.wait [#allocation3], 256  }
  0x3a   :  { %1631 = vsyncadd [#allocation3], 4294967040 }
  0x3b   :  { %1632 = dma.done.wait [#allocation6], 4160  }
  0x3c   :  { %1633 = vsyncadd [#allocation6], 4294963136 }
  0x3d   :  { %1634 = dma.done.wait [#allocation9], 8192  }
  0x3e   :  { %1635 = vsyncadd [#allocation9], 4294959104  ;;  %v100_v0 = vld [vmem:[#allocation2] sm:$0xff]  ;;  %v101_v1 = vld [vmem:[#allocation2 + $0x8] sm:$0xff]  ;;  %v112_v6 = vlaneseq  ;;  %v1649_v40 = vmov 0   ;;  %s1650_s19 = smov [#allocation11]  }
  0x3f   :  { %104 = vadd.xlane.f32.xlu0 %v100_v0  ;;  %v1346_v2 = vld [vmem:[#allocation5 + $0xe4] ss:$16 sps:$4 sm:$0xff]   ;;  %v1348_v3 = vld [vmem:[#allocation5 + $0xec] ss:$16 sps:$4 sm:$0xff]   ;;  %v1350_v4 = vld [vmem:[#allocation5 + $0xe0] ss:$16 sps:$4 sm:$0xff]   ;;  %394 = vmatprep.mubr.bf16.mxu0 %v1649_v40 }
  0x40   :  { %v1351_v5 = vld [vmem:[#allocation5 + $0xe8] ss:$16 sps:$4 sm:$0xff]   ;;  %362 = vmatprep.subr.bf16.mxu0 %v1346_v2  ;;  %405 = vmatprep.subr.bf16.mxu1 %v1348_v3  ;;  %v113_v7 = vand.u32 127, %v112_v6  ;;  %v1352_v18 = vld [vmem:[#allocation5 + $0xc4] ss:$16 sps:$4 sm:$0xff]   ;;  %s1168_s20 = sshll.u32 %s1650_s19, 4  ;;  %s1169_s20 = int_to_ptr.vmem [resolvable:$true] %s1168_s20 }
  0x41   :  { %363 = vmatpush1.bf16.msra.mxu0 %v1350_v4  ;;  %406 = vmatpush1.bf16.msra.mxu1 %v1351_v5  ;;  %v1354_v19 = vld [vmem:[#allocation5 + $0xcc] ss:$16 sps:$4 sm:$0xff]   ;;  %v1356_v20 = vld [vmem:[#allocation5 + $0xc0] ss:$16 sps:$4 sm:$0xff]   ;;  %v1357_v21 = vld [vmem:[#allocation5 + $0xc8] ss:$16 sps:$4 sm:$0xff]   ;;  %p1615_p12 = scmp.lt.s32.totalorder %s1169_s20, %s1169_s20 }
  0x42   :  { %vm114_vm0 = vcmp.lt.s32.totalorder %v113_v7, 64  ;;  %364 = vmatprep.subr.bf16.mxu0 %v1352_v18  ;;  %407 = vmatprep.subr.bf16.mxu1 %v1354_v19  ;;  %v1358_v22 = vld [vmem:[#allocation5 + $0xa4] ss:$16 sps:$4 sm:$0xff]   ;;  %v1360_v23 = vld [vmem:[#allocation5 + $0xac] ss:$16 sps:$4 sm:$0xff]  }
  0x43   :  { %106 = vadd.xlane.f32.xlu0 %v101_v1  ;;  %v1362_v24 = vld [vmem:[#allocation5 + $0xa0] ss:$16 sps:$4 sm:$0xff]   ;;  %v1363_v25 = vld [vmem:[#allocation5 + $0xa8] ss:$16 sps:$4 sm:$0xff]   ;;  %v1364_v26 = vld [vmem:[#allocation5 + $0x84] ss:$16 sps:$4 sm:$0xff]   ;;  %437 = vmatprep.mubr.bf16.mxu1 %v1649_v40 }
  0x44   :  { %v1366_v27 = vld [vmem:[#allocation5 + $0x8c] ss:$16 sps:$4 sm:$0xff]   ;;  %v1368_v28 = vld [vmem:[#allocation5 + $0x80] ss:$16 sps:$4 sm:$0xff]   ;;  %v1369_v29 = vld [vmem:[#allocation5 + $0x88] ss:$16 sps:$4 sm:$0xff]  }
  0x45   :  { %365 = vmatpush1.bf16.msra.mxu0 %v1356_v20  ;;  %408 = vmatpush1.bf16.msra.mxu1 %v1357_v21  ;;  %v1370_v30 = vld [vmem:[#allocation5 + $0x64] ss:$16 sps:$4 sm:$0xff]   ;;  %v1372_v31 = vld [vmem:[#allocation5 + $0x6c] ss:$16 sps:$4 sm:$0xff]   ;;  %v1374_v32 = vld [vmem:[#allocation5 + $0x60] ss:$16 sps:$4 sm:$0xff]  }
  0x46   :  { %366 = vmatprep.subr.bf16.mxu0 %v1358_v22  ;;  %409 = vmatprep.subr.bf16.mxu1 %v1360_v23  ;;  %v1375_v33 = vld [vmem:[#allocation5 + $0x68] ss:$16 sps:$4 sm:$0xff]   ;;  %v1376_v34 = vld [vmem:[#allocation5 + $0x44] ss:$16 sps:$4 sm:$0xff]   ;;  %v1378_v35 = vld [vmem:[#allocation5 + $0x4c] ss:$16 sps:$4 sm:$0xff]  }
  0x47   :  { %v1380_v36 = vld [vmem:[#allocation5 + $0x40] ss:$16 sps:$4 sm:$0xff]   ;;  %v1381_v37 = vld [vmem:[#allocation5 + $0x48] ss:$16 sps:$4 sm:$0xff]   ;;  %v1382_v38 = vld [vmem:[#allocation5 + $0x24] ss:$16 sps:$4 sm:$0xff]  }
  0x48   :  { %v1384_v39 = vld [vmem:[#allocation5 + $0x2c] ss:$16 sps:$4 sm:$0xff]   ;;  %v1386_v41 = vld [vmem:[#allocation5 + $0x20] ss:$16 sps:$4 sm:$0xff]   ;;  %v1387_v42 = vld [vmem:[#allocation5 + $0x28] ss:$16 sps:$4 sm:$0xff]  }
  0x49   :  { %367 = vmatpush1.bf16.msra.mxu0 %v1362_v24  ;;  %410 = vmatpush1.bf16.msra.mxu1 %v1363_v25  ;;  %v1388_v43 = vld [vmem:[#allocation5 + $0x4] ss:$16 sps:$4 sm:$0xff]   ;;  %v1390_v44 = vld [vmem:[#allocation5 + $0xc] ss:$16 sps:$4 sm:$0xff]   ;;  %v1392_v45 = vld [vmem:[#allocation5] ss:$16 sps:$4 sm:$0xff]  }
  0x4a   :  { %368 = vmatprep.subr.bf16.mxu0 %v1364_v26  ;;  %411 = vmatprep.subr.bf16.mxu1 %v1366_v27  ;;  %v1393_v46 = vld [vmem:[#allocation5 + $0x8] ss:$16 sps:$4 sm:$0xff]   ;;  %v1399_v48 = vld [vmem:[#allocation8 + $0xec] ss:$16 sps:$4 sm:$0xff]   ;;  %v1397_v2 = vld [vmem:[#allocation8 + $0xe8] ss:$16 sps:$4 sm:$0xff]  }
  0x4b   :  { %v1396_v47 = vld [vmem:[#allocation8 + $0xe4] ss:$16 sps:$4 sm:$0xff]   ;;  %v1182_v57 = vld [vmem:[%s1820_s7] ss:$0 sm:$0xff]  ;;  %v1400_v7 = vld [vmem:[#allocation8 + $0xc0] ss:$16 sps:$4 sm:$0xff]  }
  0x4c   :  { %v1183_v61 = vld [vmem:[%s1821_s8] ss:$0 sm:$0xff]  ;;  %v1402_v4 = vld [vmem:[#allocation8 + $0xc4] ss:$16 sps:$4 sm:$0xff]   ;;  %v1418_v19 = vld [vmem:[#allocation8 + $0x60] ss:$16 sps:$4 sm:$0xff]  }
  0x4d   :  { %369 = vmatpush1.bf16.msra.mxu0 %v1368_v28  ;;  %412 = vmatpush1.bf16.msra.mxu1 %v1369_v29  ;;  %v1405_v5 = vld [vmem:[#allocation8 + $0xcc] ss:$16 sps:$4 sm:$0xff]   ;;  %v1421_v20 = vld [vmem:[#allocation8 + $0x68] ss:$16 sps:$4 sm:$0xff]   ;;  %v1426_v21 = vld [vmem:[#allocation8 + $0x44] ss:$16 sps:$4 sm:$0xff]  }
  0x4e   :  { %370 = vmatprep.subr.bf16.mxu0 %v1370_v30  ;;  %413 = vmatprep.subr.bf16.mxu1 %v1372_v31  ;;  %v1423_v18 = vld [vmem:[#allocation8 + $0x6c] ss:$16 sps:$4 sm:$0xff]   ;;  %v1424_v23 = vld [vmem:[#allocation8 + $0x40] ss:$16 sps:$4 sm:$0xff]   ;;  %v1427_v24 = vld [vmem:[#allocation8 + $0x48] ss:$16 sps:$4 sm:$0xff]  }
  0x4f   :  { %v1429_v22 = vld [vmem:[#allocation8 + $0x4c] ss:$16 sps:$4 sm:$0xff]   ;;  %v1432_v25 = vld [vmem:[#allocation8 + $0x24] ss:$16 sps:$4 sm:$0xff]   ;;  %v1430_v27 = vld [vmem:[#allocation8 + $0x20] ss:$16 sps:$4 sm:$0xff]  }
  0x50   :  { %v1435_v26 = vld [vmem:[#allocation8 + $0x2c] ss:$16 sps:$4 sm:$0xff]   ;;  %v1433_v28 = vld [vmem:[#allocation8 + $0x28] ss:$16 sps:$4 sm:$0xff]   ;;  %v1438_v29 = vld [vmem:[#allocation8 + $0x4] ss:$16 sps:$4 sm:$0xff]  }
  0x51   :  { %371 = vmatpush1.bf16.msra.mxu0 %v1374_v32  ;;  %414 = vmatpush1.bf16.msra.mxu1 %v1375_v33  ;;  %v1441_v30 = vld [vmem:[#allocation8 + $0xc] ss:$16 sps:$4 sm:$0xff]   ;;  %v1436_v31 = vld [vmem:[#allocation8] ss:$16 sps:$4 sm:$0xff]   ;;  %v1439_v32 = vld [vmem:[#allocation8 + $0x8] ss:$16 sps:$4 sm:$0xff]  }
  0x52   :  { %372 = vmatprep.subr.bf16.mxu0 %v1376_v34  ;;  %415 = vmatprep.subr.bf16.mxu1 %v1378_v35  ;;  %v1442_v33 = vld [vmem:[#allocation10 + $0x78] sm:$0xff]  }
  0x53   :  { %v1443_v34 = vld [vmem:[#allocation10 + $0xf8] sm:$0xff]  }
  0x54   :  { %v1444_v35 = vld [vmem:[#allocation10 + $0x38] sm:$0xff]  }
  0x55   :  { %373 = vmatpush1.bf16.msra.mxu0 %v1380_v36  ;;  %416 = vmatpush1.bf16.msra.mxu1 %v1381_v37  ;;  %v1445_v36 = vld [vmem:[#allocation10 + $0xb8] sm:$0xff]   ;;  %v1446_v37 = vld [vmem:[#allocation10 + $0x70] sm:$0xff]  }
  0x56   :  { %374 = vmatprep.subr.bf16.mxu0 %v1382_v38  ;;  %417 = vmatprep.subr.bf16.mxu1 %v1384_v39  ;;  %v1447_v38 = vld [vmem:[#allocation10 + $0xf0] sm:$0xff]  }
  0x57   :  { %v1448_v39 = vld [vmem:[#allocation10 + $0x30] sm:$0xff]  }
  0x59   :  { %375 = vmatpush1.bf16.msra.mxu0 %v1386_v41  ;;  %418 = vmatpush1.bf16.msra.mxu1 %v1387_v42  ;;  %v1450_v41 = vld [vmem:[#allocation10 + $0x68] sm:$0xff]  }
  0x5a   :  { %376 = vmatprep.subr.bf16.mxu0 %v1388_v43  ;;  %419 = vmatprep.subr.bf16.mxu1 %v1390_v44  ;;  %v1451_v42 = vld [vmem:[#allocation10 + $0xe8] sm:$0xff]  }
  0x5b   :  { %v1452_v43 = vld [vmem:[#allocation10 + $0x28] sm:$0xff]  }
  0x5c   :  { %v1453_v44 = vld [vmem:[#allocation10 + $0xa8] sm:$0xff]  }
  0x5d   :  { %377 = vmatpush1.bf16.msra.mxu0 %v1392_v45  ;;  %420 = vmatpush1.bf16.msra.mxu1 %v1393_v46  ;;  %v1454_v45 = vld [vmem:[#allocation10 + $0x60] sm:$0xff]  }
  0x5e   :  { %662 = vmatprep.subr.bf16.mxu0 %v1396_v47  ;;  %705 = vmatprep.subr.bf16.mxu1 %v1399_v48  ;;  %v1455_v46 = vld [vmem:[#allocation10 + $0xe0] sm:$0xff]  }
  0x5f   :  { %v1456_v47 = vld [vmem:[#allocation10 + $0x20] sm:$0xff]  }
  0x60   :  { %v1457_v48 = vld [vmem:[#allocation10 + $0xa0] sm:$0xff]  }
  0xc8   :  { %v105_v8 = vpop.xlane.xlu0 %104 }
  0xc9   :  { %v108_v9 = vmul.f32 0.015625, %v105_v8  ;;  %v1403_v8 = vld [vmem:[#allocation8 + $0xc8] ss:$16 sps:$4 sm:$0xff]  }
  0xcb   :  { %v110_v10 = vsub.f32 %v100_v0, %v108_v9  ;;  %v1408_v9 = vld [vmem:[#allocation8 + $0xa4] ss:$16 sps:$4 sm:$0xff]  }
  0xcc   :  { %v107_v11 = vpop.xlane.xlu0 %106 }
  0xcd   :  { %v109_v12 = vmul.f32 0.015625, %v107_v11  ;;  %v1720_v13 = vsel %vm114_vm0, %v110_v10, 0.0  ;;  %v1411_v10 = vld [vmem:[#allocation8 + $0xac] ss:$16 sps:$4 sm:$0xff]   ;;  %v1406_v11 = vld [vmem:[#allocation8 + $0xa0] ss:$16 sps:$4 sm:$0xff]  }
  0xce   :  { %v117_v14 = vmul.f32 %v1720_v13, %v1720_v13 }
  0xcf   :  { %v111_v15 = vsub.f32 %v101_v1, %v109_v12  ;;  %v1394_v1 = vld [vmem:[#allocation8 + $0xe0] ss:$16 sps:$4 sm:$0xff]   ;;  %v1409_v12 = vld [vmem:[#allocation8 + $0xa8] ss:$16 sps:$4 sm:$0xff]  }
  0xd0   :  { %119 = vadd.xlane.f32.xlu1 %v117_v14  ;;  %v1417_v14 = vld [vmem:[#allocation8 + $0x8c] ss:$16 sps:$4 sm:$0xff]  }
  0xd1   :  { %v1724_v16 = vsel %vm114_vm0, %v111_v15, 0.0  ;;  %v1412_v15 = vld [vmem:[#allocation8 + $0x80] ss:$16 sps:$4 sm:$0xff]  }
  0xd2   :  { %v118_v17 = vmul.f32 %v1724_v16, %v1724_v16 }
  0xd4   :  { %121 = vadd.xlane.f32.xlu1 %v118_v17  ;;  %v1420_v17 = vld [vmem:[#allocation8 + $0x64] ss:$16 sps:$4 sm:$0xff]  }
 0x159   :  { %v120_v49 = vpop.xlane.xlu1 %119 }
 0x15a   :  { %v123_v50 = vmul.f32 0.015625, %v120_v49  ;;  %v1458_v49 = vld [vmem:[#allocation10 + $0x58] sm:$0xff]  }
 0x15c   :  { %v125_v51 = vadd.f32 1e-06, %v123_v50  ;;  %v1459_v50 = vld [vmem:[#allocation10 + $0xd8] sm:$0xff]  }
 0x15d   :  { %v122_v52 = vpop.xlane.xlu1 %121 }
 0x15e   :  { %1474 = vrsqrt.f32 %v125_v51  ;;  %v124_v53 = vmul.f32 0.015625, %v122_v52  ;;  %v1460_v51 = vld [vmem:[#allocation10 + $0x18] sm:$0xff]  }
 0x15f   :  { %v1461_v52 = vld [vmem:[#allocation10 + $0x98] sm:$0xff]  }
 0x160   :  { %v126_v54 = vadd.f32 1e-06, %v124_v53  ;;  %v1462_v53 = vld [vmem:[#allocation10 + $0x50] sm:$0xff]  }
 0x162   :  { %1476 = vrsqrt.f32 %v126_v54  ;;  %v1463_v54 = vld [vmem:[#allocation10 + $0xd0] sm:$0xff]  }
 0x16b   :  { %v1475_v55 = vpop.eup %1474 }
 0x16c   :  { %v129_v56 = vmul.f32 %v1475_v55, %v1720_v13  ;;  %v1414_v13 = vld [vmem:[#allocation8 + $0x84] ss:$16 sps:$4 sm:$0xff]  }
 0x16d   :  { %v1464_v55 = vld [vmem:[#allocation10 + $0x10] sm:$0xff]  }
 0x16e   :  { %v137_v60 = vmul.f32 %v1182_v57, %v129_v56  ;;  %v1465_v56 = vld [vmem:[#allocation10 + $0x90] sm:$0xff]  }
 0x16f   :  { %v1477_v58 = vpop.eup %1476 }
 0x170   :  { %v130_v59 = vmul.f32 %v1477_v58, %v1724_v16  ;;  %v145_v63 = vadd.f32 %v1183_v61, %v137_v60  ;;  %v1415_v16 = vld [vmem:[#allocation8 + $0x88] ss:$16 sps:$4 sm:$0xff]  }
 0x171   :  { %v1467_v58 = vld [vmem:[#allocation10 + $0xc8] sm:$0xff]  }
 0x172   :  { %v138_v62 = vmul.f32 %v1182_v57, %v130_v59  ;;  %v1466_v57 = vld [vmem:[#allocation10 + $0x48] sm:$0xff]  }
 0x173   :  { %v1468_v59 = vld [vmem:[#allocation10 + $0x8] sm:$0xff]  }
 0x174   :  { %v146_v0 = vadd.f32 %v1183_v61, %v138_v62  ;;  %v1469_v60 = vld [vmem:[#allocation10 + $0x88] sm:$0xff]   ;;  %v1470_v61 = vld [vmem:[#allocation10 + $0x40] sm:$0xff]  }
 0x175   :  { %v1471_v62 = vld [vmem:[#allocation10 + $0xc0] sm:$0xff]  }
 0x176   :  { %v1736_v3 = vpack.c.bf16 %v146_v0, %v145_v63  ;;  %v1472_v63 = vld [vmem:[#allocation10] sm:$0xff]  }
 0x177   :  { %v1473_v0 = vld [vmem:[#allocation10 + $0x80] sm:$0xff]  }
 0x178   :  { %395 = vmatmul.mubr.bf16.vlgmr.msra.gmra.mxu0 %v1736_v3  ;;  %438 = vmatmul.mubr.bf16.vlgmr.msra.gmra.mxu1 %v1736_v3 }
 0x179   :  { %663 = vmatpush1.bf16.msra.mxu0 %v1394_v1  ;;  %706 = vmatpush1.bf16.msra.mxu1 %v1397_v2 }
 0x17a   :  { %664 = vmatprep.subr.bf16.mxu0 %v1402_v4  ;;  %707 = vmatprep.subr.bf16.mxu1 %v1405_v5  ;;  %v1751_v5 = vshrl.u32 %v112_v6, 7 }
 0x17b   :  { %694 = vmatprep.mubr.bf16.mxu0 %v1649_v40  ;;  %737 = vmatprep.mubr.bf16.mxu1 %v1649_v40  ;;  %v1449_v40 = vld [vmem:[#allocation10 + $0xb0] sm:$0xff]  }
 0x17d   :  { %665 = vmatpush1.bf16.msra.mxu0 %v1400_v7  ;;  %708 = vmatpush1.bf16.msra.mxu1 %v1403_v8 }
 0x17e   :  { %666 = vmatprep.subr.bf16.mxu0 %v1408_v9  ;;  %709 = vmatprep.subr.bf16.mxu1 %v1411_v10  ;;  %v480_v9 = vld [vmem:[%s1817_s4] sm:$0xf]  ;;  %v184_v10 = vsub.s32 0, %v1751_v5 }
 0x180   :  { %v485_v6 = vrot.slane %v480_v9, %v184_v10 }
 0x181   :  { %667 = vmatpush1.bf16.msra.mxu0 %v1406_v11  ;;  %710 = vmatpush1.bf16.msra.mxu1 %v1409_v12  ;;  %v192_v11 = vsub.s32 2, %v1751_v5  ;;  %v188_v12 = vsub.s32 1, %v1751_v5 }
 0x182   :  { %668 = vmatprep.subr.bf16.mxu0 %v1414_v13  ;;  %711 = vmatprep.subr.bf16.mxu1 %v1417_v14  ;;  %v196_v13 = vsub.s32 3, %v1751_v5 }
 0x183   :  { %v493_v14 = vrot.slane %v480_v9, %v192_v11 }
 0x185   :  { %669 = vmatpush1.bf16.msra.mxu0 %v1412_v15  ;;  %712 = vmatpush1.bf16.msra.mxu1 %v1415_v16 }
 0x186   :  { %670 = vmatprep.subr.bf16.mxu0 %v1420_v17  ;;  %713 = vmatprep.subr.bf16.mxu1 %v1423_v18  ;;  %v489_v17 = vrot.slane %v480_v9, %v188_v12  ;;  %v497_v18 = vrot.slane %v480_v9, %v196_v13 }
 0x189   :  { %671 = vmatpush1.bf16.msra.mxu0 %v1418_v19  ;;  %714 = vmatpush1.bf16.msra.mxu1 %v1421_v20 }
 0x18a   :  { %672 = vmatprep.subr.bf16.mxu0 %v1426_v21  ;;  %715 = vmatprep.subr.bf16.mxu1 %v1429_v22 }
 0x18d   :  { %673 = vmatpush1.bf16.msra.mxu0 %v1424_v23  ;;  %716 = vmatpush1.bf16.msra.mxu1 %v1427_v24 }
 0x18e   :  { %674 = vmatprep.subr.bf16.mxu0 %v1432_v25  ;;  %717 = vmatprep.subr.bf16.mxu1 %v1435_v26 }
 0x191   :  { %675 = vmatpush1.bf16.msra.mxu0 %v1430_v27  ;;  %718 = vmatpush1.bf16.msra.mxu1 %v1433_v28 }
 0x192   :  { %676 = vmatprep.subr.bf16.mxu0 %v1438_v29  ;;  %719 = vmatprep.subr.bf16.mxu1 %v1441_v30 }
 0x195   :  { %677 = vmatpush1.bf16.msra.mxu0 %v1436_v31  ;;  %720 = vmatpush1.bf16.msra.mxu1 %v1439_v32 }
 0x196   :  { %1289 = vmatprep.subr.bf16.mxu0 %v1442_v33  ;;  %1311 = vmatprep.subr.bf16.mxu1 %v1443_v34 }
 0x198   :  { %695 = vmatmul.mubr.bf16.vlgmr.msra.gmra.mxu0 %v1736_v3  ;;  %738 = vmatmul.mubr.bf16.vlgmr.msra.gmra.mxu1 %v1736_v3 }
 0x199   :  { %1290 = vmatpush3.bf16.msra.mxu0 %v1444_v35  ;;  %1312 = vmatpush3.bf16.msra.mxu1 %v1445_v36 }
 0x19a   :  { %1291 = vmatprep.subr.bf16.mxu0 %v1446_v37  ;;  %1313 = vmatprep.subr.bf16.mxu1 %v1447_v38 }
 0x19d   :  { %1292 = vmatpush3.bf16.msra.mxu0 %v1448_v39  ;;  %1314 = vmatpush3.bf16.msra.mxu1 %v1449_v40 }
 0x19e   :  { %1293 = vmatprep.subr.bf16.mxu0 %v1450_v41  ;;  %1315 = vmatprep.subr.bf16.mxu1 %v1451_v42 }
 0x1a1   :  { %1294 = vmatpush3.bf16.msra.mxu0 %v1452_v43  ;;  %1316 = vmatpush3.bf16.msra.mxu1 %v1453_v44 }
 0x1a2   :  { %1295 = vmatprep.subr.bf16.mxu0 %v1454_v45  ;;  %1317 = vmatprep.subr.bf16.mxu1 %v1455_v46 }
 0x1a5   :  { %1296 = vmatpush3.bf16.msra.mxu0 %v1456_v47  ;;  %1318 = vmatpush3.bf16.msra.mxu1 %v1457_v48 }
 0x1a6   :  { %1297 = vmatprep.subr.bf16.mxu0 %v1458_v49  ;;  %1319 = vmatprep.subr.bf16.mxu1 %v1459_v50 }
 0x1a9   :  { %1298 = vmatpush3.bf16.msra.mxu0 %v1460_v51  ;;  %1320 = vmatpush3.bf16.msra.mxu1 %v1461_v52 }
 0x1aa   :  { %1299 = vmatprep.subr.bf16.mxu0 %v1462_v53  ;;  %1321 = vmatprep.subr.bf16.mxu1 %v1463_v54 }
 0x1ad   :  { %1300 = vmatpush3.bf16.msra.mxu0 %v1464_v55  ;;  %1322 = vmatpush3.bf16.msra.mxu1 %v1465_v56 }
 0x1ae   :  { %1301 = vmatprep.subr.bf16.mxu0 %v1466_v57  ;;  %1323 = vmatprep.subr.bf16.mxu1 %v1467_v58 }
 0x1b1   :  { %1302 = vmatpush3.bf16.msra.mxu0 %v1468_v59  ;;  %1324 = vmatpush3.bf16.msra.mxu1 %v1469_v60  ;;  %v180_v59 = vld [vmem:[#allocation7] sm:$0xf] }
 0x1b2   :  { %1303 = vmatprep.subr.bf16.mxu0 %v1470_v61  ;;  %1325 = vmatprep.subr.bf16.mxu1 %v1471_v62  ;;  %v185_v62 = vrot.slane %v180_v59, %v184_v10 }
 0x1b5   :  { %1304 = vmatpush3.bf16.msra.mxu0 %v1472_v63  ;;  %1326 = vmatpush3.bf16.msra.mxu1 %v1473_v0  ;;  %v189_v63 = vrot.slane %v180_v59, %v188_v12 }
 0x238   :  { %v1742_v1 = vpop.f32.mrf.mxu0  ;;  %v1744_v2 = vpop.f32.mrf.mxu1 }
 0x23a   :  { %v1746_v3 = vpop.f32.mrf.mxu0  ;;  %v1748_v4 = vpop.f32.mrf.mxu1 }
 0x23c   :  { %v1753_v7 = vpop.f32.mrf.mxu0  ;;  %v1755_v8 = vpop.f32.mrf.mxu1 }
 0x23e   :  { %v1768_v15 = vpop.f32.mrf.mxu0  ;;  %v1770_v16 = vpop.f32.mrf.mxu1 }
 0x23f   :  { %v403_v5 = vadd.f32 %v1768_v15, %v189_v63 }
 0x258   :  { %v696_v19 = vpop.f32.mrf.mxu0  ;;  %v739_v20 = vpop.f32.mrf.mxu1 }
 0x259   :  { %v1776_v21 = vadd.f32 %v696_v19, %v485_v6  ;;  %v1778_v22 = vadd.f32 %v739_v20, %v493_v14  ;;  %v397_v19 = vadd.f32 %v1742_v1, %v185_v62  ;;  %v399_v20 = vadd.f32 %v1746_v3, %v189_v63 }
 0x25a   :  { %v698_v23 = vpop.f32.mrf.mxu0  ;;  %v741_v24 = vpop.f32.mrf.mxu1 }
 0x25b   :  { %v1248_v25 = vmul.f32 -1.442695, %v1776_v21  ;;  %v1250_v26 = vmul.f32 -1.442695, %v1778_v22  ;;  %v699_v27 = vadd.f32 %v698_v23, %v489_v17  ;;  %v1782_v28 = vadd.f32 %v741_v24, %v497_v18 }
 0x25c   :  { %v700_v29 = vpop.f32.mrf.mxu0  ;;  %v743_v30 = vpop.f32.mrf.mxu1 }
 0x25d   :  { %1478 = vpow2.f32 %v1248_v25  ;;  %v1249_v31 = vmul.f32 -1.442695, %v699_v27  ;;  %v1251_v32 = vmul.f32 -1.442695, %v1782_v28  ;;  %v701_v33 = vadd.f32 %v700_v29, %v485_v6 }
 0x25e   :  { %1480 = vpow2.f32 %v1250_v26  ;;  %v744_v34 = vadd.f32 %v743_v30, %v493_v14  ;;  %v702_v35 = vpop.f32.mrf.mxu0  ;;  %v745_v36 = vpop.f32.mrf.mxu1  ;;  %v193_v14 = vrot.slane %v180_v59, %v192_v11  ;;  %v401_v25 = vadd.f32 %v1753_v7, %v185_v62 }
 0x25f   :  { %1482 = vpow2.f32 %v1249_v31  ;;  %v1252_v37 = vmul.f32 -1.442695, %v701_v33  ;;  %v703_v38 = vadd.f32 %v702_v35, %v489_v17  ;;  %v746_v39 = vadd.f32 %v745_v36, %v497_v18 }
 0x260   :  { %1484 = vpow2.f32 %v1251_v32  ;;  %v1254_v40 = vmul.f32 -1.442695, %v744_v34  ;;  %v197_v17 = vrot.slane %v180_v59, %v196_v13  ;;  %v444_v11 = vadd.f32 %v1755_v8, %v193_v14 }
 0x261   :  { %1486 = vpow2.f32 %v1252_v37  ;;  %v1253_v41 = vmul.f32 -1.442695, %v703_v38  ;;  %v1255_v42 = vmul.f32 -1.442695, %v746_v39  ;;  %v440_v7 = vadd.f32 %v1744_v2, %v193_v14  ;;  %v1256_v2 = vld [vmem:[%s1819_s6] ss:$0 sm:$0xff] }
 0x262   :  { %1488 = vpow2.f32 %v1254_v40  ;;  %v442_v3 = vadd.f32 %v1748_v4, %v197_v17  ;;  %s1610_s6 = scalar_lea.vmem %s1169_s20, 256 }
 0x263   :  { %1490 = vpow2.f32 %v1253_v41  ;;  %p1611_p11 = scmp.ne.s32.totalorder %s1169_s20, %s1610_s6  ;;  %p1616_p13 = scmp.lt.s32.totalorder %s1610_s6, %s1610_s6 }
 0x264   :  { %1492 = vpow2.f32 %v1255_v42 }
 0x265   :  { %p1617_p0 = por %p1616_p13, %p1615_p12 }
 0x267   :  { %p1618_p1 = pnand %p1617_p0, %p1611_p11 }
 0x26a   :  { %v1479_v43 = vpop.eup %1478 }
 0x26b   :  { %v1481_v44 = vpop.eup %1480  ;;  %v772_v45 = vadd.f32 1.0, %v1479_v43 }
 0x26c   :  { %v1483_v46 = vpop.eup %1482  ;;  %v774_v47 = vadd.f32 1.0, %v1481_v44 }
 0x26d   :  { %v1485_v48 = vpop.eup %1484  ;;  %1494 = vrcp.f32 %v772_v45  ;;  %v773_v49 = vadd.f32 1.0, %v1483_v46 }
 0x26e   :  { %v1487_v50 = vpop.eup %1486  ;;  %1496 = vrcp.f32 %v774_v47  ;;  %v775_v51 = vadd.f32 1.0, %v1485_v48 }
 0x26f   :  { %v1489_v52 = vpop.eup %1488  ;;  %1498 = vrcp.f32 %v773_v49  ;;  %v776_v53 = vadd.f32 1.0, %v1487_v50 }
 0x270   :  { %v1491_v54 = vpop.eup %1490  ;;  %1500 = vrcp.f32 %v775_v51  ;;  %v778_v55 = vadd.f32 1.0, %v1489_v52 }
 0x271   :  { %v1493_v56 = vpop.eup %1492  ;;  %1502 = vrcp.f32 %v776_v53  ;;  %v777_v57 = vadd.f32 1.0, %v1491_v54 }
 0x272   :  { %1504 = vrcp.f32 %v778_v55  ;;  %v779_v58 = vadd.f32 1.0, %v1493_v56 }
 0x273   :  { %1506 = vrcp.f32 %v777_v57 }
 0x274   :  { %1508 = vrcp.f32 %v779_v58 }
 0x27a   :  { %v1495_v60 = vpop.eup %1494 }
 0x27b   :  { %v1497_v61 = vpop.eup %1496  ;;  %v796_v12 = vmul.f32 %v1495_v60, %v1776_v21 }
 0x27c   :  { %v1499_v0 = vpop.eup %1498  ;;  %v798_v13 = vmul.f32 %v1497_v61, %v1778_v22 }
 0x27d   :  { %v1501_v9 = vpop.eup %1500  ;;  %v797_v23 = vmul.f32 %v1499_v0, %v699_v27  ;;  %v446_v27 = vadd.f32 %v1770_v16, %v197_v17 }
 0x27e   :  { %v1503_v6 = vpop.eup %1502  ;;  %v799_v26 = vmul.f32 %v1501_v9, %v1782_v28  ;;  %v806_v8 = vmul.f32 %v798_v13, %v440_v7 }
 0x27f   :  { %v1505_v18 = vpop.eup %1504  ;;  %v800_v24 = vmul.f32 %v1503_v6, %v701_v33  ;;  %v805_v21 = vmul.f32 %v797_v23, %v399_v20 }
 0x280   :  { %v1507_v10 = vpop.eup %1506  ;;  %v802_v29 = vmul.f32 %v1505_v18, %v744_v34  ;;  %v804_v34 = vmul.f32 %v796_v12, %v397_v19  ;;  %v807_v35 = vmul.f32 %v799_v26, %v442_v3 }
 0x281   :  { %v1509_v30 = vpop.eup %1508  ;;  %v801_v1 = vmul.f32 %v1507_v10, %v703_v38  ;;  %v808_v31 = vmul.f32 %v800_v24, %v401_v25 }
 0x282   :  { %v803_v32 = vmul.f32 %v1509_v30, %v746_v39  ;;  %v810_v33 = vmul.f32 %v802_v29, %v444_v11 }
 0x283   :  { %v809_v28 = vmul.f32 %v801_v1, %v403_v5  ;;  %v812_v15 = vpack.c.bf16 %v808_v31, %v804_v34 }
 0x284   :  { %v811_v36 = vmul.f32 %v803_v32, %v446_v27  ;;  %v814_v22 = vpack.c.bf16 %v810_v33, %v806_v8 }
 0x285   :  { %v813_v37 = vpack.c.bf16 %v809_v28, %v805_v21 }
 0x286   :  { %v815_v40 = vpack.c.bf16 %v811_v36, %v807_v35 }
 0x287   :  { %1111 = vmatprep.mubr.bf16.mxu0 %v813_v37 }
 0x288   :  { %1152 = vmatprep.mubr.bf16.mxu1 %v815_v40  ;;  %1112 = vmatmul.mubr.bf16.vlgmr.msra.gmra.mxu0 %v812_v15 }
 0x289   :  { %1153 = vmatmul.mubr.bf16.vlgmr.msra.gmra.mxu1 %v814_v22 }
 0x348   :  { %v1305_v4 = vpop.f32.mrf.mxu0 }
 0x349   :  { %v1327_v16 = vpop.f32.mrf.mxu1 }
 0x34a   :  { %v1306_v38 = vpop.f32.mrf.mxu0 }
 0x34b   :  { %v1307_v39 = vadd.f32 %v1306_v38, %v1305_v4  ;;  %v1328_v41 = vpop.f32.mrf.mxu1 }
 0x34c   :  { %v1308_v42 = vpop.f32.mrf.mxu0  ;;  %v1329_v44 = vadd.f32 %v1328_v41, %v1327_v16 }
 0x34d   :  { %v1114_v43 = vadd.f32 %v1307_v39, %v1256_v2  ;;  %v1330_v45 = vpop.f32.mrf.mxu1 }
 0x34e   :  { %v1309_v46 = vpop.f32.mrf.mxu0 }
 0x34f   :  { %v1155_v47 = vadd.f32 %v1329_v44, %v1114_v43  ;;  %v1310_v48 = vadd.f32 %v1309_v46, %v1308_v42  ;;  %v1331_v49 = vpop.f32.mrf.mxu1 }
 0x350   :  { %v1332_v51 = vadd.f32 %v1331_v49, %v1330_v45 }
 0x351   :  { %1161 = vst [vmem:[#allocation11] sm:$0xff] %v1155_v47  ;;  %v1117_v50 = vadd.f32 %v1310_v48, %v1256_v2 }
 0x353   :  { %v1158_v52 = vadd.f32 %v1332_v51, %v1117_v50 }
 0x355   :  { %1162 = vst [vmem:[#allocation11 + $0x8] sm:$0xff] %v1158_v52 }
 0x356   :  { %1621 = shalt.err (!%p1618_p1)
}
 0x357   :  { %1174 = dma.vmem_to_hbm [thread:$0]  %s1169_s20, 256, %s1822_s9, [#allocation4], %s1643_s1, %s1643_s1, %s1644_s24  }
 0x358   :  { %1636 = dma.done.wait [#allocation4], 256  }
 0x359   :  { %1637 = vsyncadd [#allocation4], 4294967040 }
 0x35a   :  { %1178 = vsyncpa [#allocation3], 1 }
 0x35b   :  { %1179 = vsyncpa [#allocation6], 1 }
 0x35c   :  { %1180 = vsyncpa [#allocation9], 1 }
 0x35d   :  { %1181 = vsyncpa [#allocation4], 1 }

</bundles_post_ra>
